<compile_context>
chip_gen: v7x
topology: tpu7x:2x2x1
jax: 0.10.0
libtpu: 0.0.40
codegen_flags: <defaults>
</compile_context>

<pallas_src>
import math

import jax
import jax.numpy as jnp
from jax.experimental import pallas as pl
from jax.experimental.pallas import tpu as pltpu


def _round_up(x, m):
    return (x + m - 1) // m * m


def _vmem_capacity_bytes():
    try:
        info = pltpu.get_tpu_info()
        cap = getattr(info, "vmem_capacity_bytes", None)
        if cap:
            return int(cap)
    except Exception:
        pass
    return 64 * 1024 * 1024  # conservative: v7x per-TC VMEM


def _pick_tm(m):
    if m >= 1024:
        return 512
    if m >= 512:
        return 256
    if m >= 256:
        return 128
    # Small M: aim for >= 2 grid steps (2 TensorCores on v7x), 8-aligned.
    return _round_up(max(-(-m // 2), 8), 8)


def _pick_tff(ffp):
    for cand in (512, 256, 128):
        if ffp % cand == 0:
            return cand
    return ffp


# --------------------------------------------------------------------------
# Kernels
# --------------------------------------------------------------------------
def ffn_resident_kernel(x_ref, w1_ref, b1_ref, w2_ref, b2_ref, o_ref):
    """One (TM, Dp) token tile, full weights resident in VMEM."""
    x = x_ref[...]                                                # (TM, Dp) bf16
    h = jnp.dot(x, w1_ref[...],
                preferred_element_type=jnp.float32) + b1_ref[...]  # f32
    g = jax.nn.gelu(h, approximate=True)                          # tanh -> EUP
    y = jnp.dot(g.astype(jnp.bfloat16), w2_ref[...],
                preferred_element_type=jnp.float32) + b2_ref[...]
    o_ref[...] = y.astype(o_ref.dtype)


def ffn_fftiled_kernel(x_ref, w1_ref, b1_ref, w2_ref, b2_ref, o_ref, acc_ref):
    """Grid (M tile i, FF tile f); accumulate partial fc2 into a f32 scratch."""
    f = pl.program_id(1)

    @pl.when(f == 0)
    def _():
        acc_ref[...] = jnp.broadcast_to(b2_ref[...], acc_ref.shape)

    h = jnp.dot(x_ref[...], w1_ref[...],
                preferred_element_type=jnp.float32) + b1_ref[...]
    g = jax.nn.gelu(h, approximate=True)
    acc_ref[...] += jnp.dot(g.astype(jnp.bfloat16), w2_ref[...],
                            preferred_element_type=jnp.float32)

    @pl.when(f == pl.num_programs(1) - 1)
    def _():
        o_ref[...] = acc_ref[...].astype(o_ref.dtype)


# --------------------------------------------------------------------------
# pallas_call builders
# --------------------------------------------------------------------------
def _build_resident_call(m_pad, tm, dp, ffp, vmem_cap):
    grid = (m_pad // tm,)
    footprint = (2 * dp * ffp * 2            # bf16 weights (single copy)
                 + (ffp + dp) * 4            # biases
                 + 2 * tm * dp * 2           # x tiles (bf16, double-buffered)
                 + 2 * tm * dp * 4           # out tiles
                 + tm * ffp * 4)             # GELU intermediate
    vmem_limit = int(min(max(footprint * 2, 32 * 1024 * 1024),
                         int(0.75 * vmem_cap)))
    cost = pl.CostEstimate(
        flops=int(4 * m_pad * dp * ffp),
        transcendentals=int(m_pad * ffp),
        bytes_accessed=int(m_pad * dp * 2 + m_pad * dp * 4
                           + 2 * dp * ffp * 2 + (ffp + dp) * 4),
    )
    return pl.pallas_call(
        ffn_resident_kernel,
        out_shape=jax.ShapeDtypeStruct((m_pad, dp), jnp.float32),
        grid=grid,
        in_specs=[
            pl.BlockSpec((tm, dp), lambda i: (i, 0)),     # x tile (bf16)
            pl.BlockSpec((dp, ffp), lambda i: (0, 0)),    # w1 (bf16)
            pl.BlockSpec((1, ffp), lambda i: (0, 0)),     # b1 (f32)
            pl.BlockSpec((ffp, dp), lambda i: (0, 0)),    # w2 (bf16)
            pl.BlockSpec((1, dp), lambda i: (0, 0)),      # b2 (f32)
        ],
        out_specs=pl.BlockSpec((tm, dp), lambda i: (i, 0)),
        compiler_params=pltpu.CompilerParams(
            dimension_semantics=("parallel",),
            vmem_limit_bytes=vmem_limit),
        cost_estimate=cost,
    )


def _build_fftiled_call(m_pad, tm, dp, ffp, tff, vmem_cap):
    grid_m = m_pad // tm
    grid = (grid_m, ffp // tff)
    footprint = (2 * 2 * dp * tff * 2        # double-buffered bf16 weight tiles
                 + 2 * (tff + dp) * 4        # biases
                 + 2 * tm * dp * 2           # x tiles (bf16)
                 + 2 * tm * dp * 4           # out tiles
                 + tm * dp * 4               # accumulator
                 + tm * tff * 4)             # GELU intermediate
    vmem_limit = int(min(max(footprint * 2, 32 * 1024 * 1024),
                         int(0.75 * vmem_cap)))
    cost = pl.CostEstimate(
        flops=int(4 * m_pad * dp * ffp),
        transcendentals=int(m_pad * ffp),
        bytes_accessed=int(m_pad * dp * 2 + m_pad * dp * 4
                           + grid_m * (2 * dp * ffp * 2 + (ffp + dp) * 4)),
    )
    return pl.pallas_call(
        ffn_fftiled_kernel,
        out_shape=jax.ShapeDtypeStruct((m_pad, dp), jnp.float32),
        grid=grid,
        in_specs=[
            pl.BlockSpec((tm, dp), lambda i, f: (i, 0)),    # x tile (bf16)
            pl.BlockSpec((dp, tff), lambda i, f: (0, f)),   # w1 FF slice
            pl.BlockSpec((1, tff), lambda i, f: (0, f)),    # b1 FF slice
            pl.BlockSpec((tff, dp), lambda i, f: (f, 0)),   # w2 FF slice
            pl.BlockSpec((1, dp), lambda i, f: (0, 0)),     # b2
        ],
        out_specs=pl.BlockSpec((tm, dp), lambda i, f: (i, 0)),
        scratch_shapes=[pltpu.VMEM((tm, dp), jnp.float32)],
        compiler_params=pltpu.CompilerParams(
            dimension_semantics=("parallel", "arbitrary"),
            vmem_limit_bytes=vmem_limit),
        cost_estimate=cost,
    )


# --------------------------------------------------------------------------
# Wrapper (jit-compatible; weight padding hoisted to prepare_ffn_params)
# --------------------------------------------------------------------------
def prepare_ffn_params(w1, b1, w2, b2):
    """Pad to lane-dense shapes and pre-cast weights to bf16. Call ONCE."""
    dim, ff_dim = w1.shape
    dp = _round_up(dim, 128)
    ffp = _round_up(ff_dim, 128)
    w1p = jnp.pad(w1.astype(jnp.float32),
                  ((0, dp - dim), (0, ffp - ff_dim))).astype(jnp.bfloat16)
    w2p = jnp.pad(w2.astype(jnp.float32),
                  ((0, ffp - ff_dim), (0, dp - dim))).astype(jnp.bfloat16)
    b1p = jnp.pad(b1.astype(jnp.float32), (0, ffp - ff_dim)).reshape(1, ffp)
    b2p = jnp.pad(b2.astype(jnp.float32), (0, dp - dim)).reshape(1, dp)
    return {"w1": w1p, "b1": b1p, "w2": w2p, "b2": b2p}


def position_wise_feed_forward(x, params, *, force_ff_tiling=False):
    """Mirrors PositionWiseFeedForward.forward.

    x      : (num_particles, ..., dim) — particles share fc1/fc2 weights.
    params : output of prepare_ffn_params.
    Returns a list of num_particles arrays of shape x.shape[1:-1] + (dim,).
    """
    w1p, b1p, w2p, b2p = params["w1"], params["b1"], params["w2"], params["b2"]
    num_particles = x.shape[0]
    dim = x.shape[-1]
    lead = x.shape[1:-1]
    dp, ffp = w1p.shape

    # Flatten particles + leading dims into one token axis M; bf16 activations.
    x2d = x.reshape(-1, dim).astype(jnp.bfloat16)
    m = x2d.shape[0]

    tm = _pick_tm(m)
    m_pad = _round_up(m, tm)
    pad_m, pad_d = m_pad - m, dp - dim
    xp = jnp.pad(x2d, ((0, pad_m), (0, pad_d))) if (pad_m or pad_d) else x2d

    vmem_cap = _vmem_capacity_bytes()
    resident_fp = (2 * dp * ffp * 2 + (ffp + dp) * 4
                   + 2 * tm * dp * 2 + 2 * tm * dp * 4 + tm * ffp * 4)
    use_resident = (not force_ff_tiling) and resident_fp < 0.5 * vmem_cap

    if use_resident:
        fn = _build_resident_call(m_pad, tm, dp, ffp, vmem_cap)
    else:
        tff = _pick_tff(ffp)
        fn = _build_fftiled_call(m_pad, tm, dp, ffp, tff, vmem_cap)

    out = fn(xp, w1p, b1p, w2p, b2p)
    out = out[:m, :dim].reshape((num_particles,) + lead + (dim,))
    return [out[i] for i in range(num_particles)]


if __name__ == "__main__":
    num_particles, B, S, dim, ff_dim = 2, 2, 8, 32, 64

    root = jax.random.PRNGKey(0)
    kx, k1, k2, k3, k4 = jax.random.split(root, 5)
    x = jax.random.normal(kx, (num_particles, B, S, dim), jnp.float32)

    # Deterministic stand-ins for nn.Linear init (bounded by 1/sqrt(fan_in)).
    bound1 = 1.0 / math.sqrt(dim)
    w1 = jax.random.uniform(k1, (dim, ff_dim), jnp.float32, -bound1, bound1)
    b1 = jax.random.uniform(k2, (ff_dim,), jnp.float32, -bound1, bound1)
    bound2 = 1.0 / math.sqrt(ff_dim)
    w2 = jax.random.uniform(k3, (ff_dim, dim), jnp.float32, -bound2, bound2)
    b2 = jax.random.uniform(k4, (dim,), jnp.float32, -bound2, bound2)

    params = prepare_ffn_params(w1, b1, w2, b2)   # one-time padding / bf16 cast

    # Default path (resident weights at this small size).
    outs = position_wise_feed_forward(x, params)
    outs = [jax.block_until_ready(o) for o in outs]
    assert len(outs) == num_particles
    assert all(o.shape == (B, S, dim) for o in outs)

    # Also exercise the FF-tiled accumulator path once for correctness.
    outs_ff = position_wise_feed_forward(x, params, force_ff_tiling=True)
    outs_ff = [jax.block_until_ready(o) for o in outs_ff]

    # Loose check vs pure-JAX f32 exact-gelu reference (kernel uses bf16 MXU
    # matmuls + tanh-approximate GELU).
    for i in range(num_particles):
        ref = jax.nn.gelu(x[i] @ w1 + b1, approximate=False) @ w2 + b2
        err_a = float(jnp.max(jnp.abs(outs[i] - ref)))
        err_b = float(jnp.max(jnp.abs(outs_ff[i] - ref)))
        assert err_a < 0.1, f"particle {i}: resident path max abs err {err_a}"
        assert err_b < 0.1, f"particle {i}: ff-tiled path max abs err {err_b}"

    print("KERNEL_OK")
</pallas_src>

<mosaic_0001>
module attributes {stable_mosaic.version = 11 : i64} {
  func.func @ffn_resident_kernel(%arg0: i32, %arg1: memref<16x128xbf16, #tpu.memory_space<vmem>>, %arg2: memref<128x128xbf16, #tpu.memory_space<vmem>>, %arg3: memref<1x128xf32, #tpu.memory_space<vmem>>, %arg4: memref<128x128xbf16, #tpu.memory_space<vmem>>, %arg5: memref<1x128xf32, #tpu.memory_space<vmem>>, %arg6: memref<16x128xf32, #tpu.memory_space<vmem>>) attributes {dimension_semantics = [#tpu.dimension_semantics<parallel>], iteration_bounds = array<i64: 2>, scalar_prefetch = 0 : i64, scratch_operands = 0 : i64, tpu.core_type = #tpu.core_type<tc>, window_params = [{transform_indices = @transform_0, window_bounds = array<i64: 16, 128>}, {pipeline_mode = #tpu.pipeline_mode<synchronous>, transform_indices = @transform_1, window_bounds = array<i64: 128, 128>}, {pipeline_mode = #tpu.pipeline_mode<synchronous>, transform_indices = @transform_2, window_bounds = array<i64: 1, 128>}, {pipeline_mode = #tpu.pipeline_mode<synchronous>, transform_indices = @transform_3, window_bounds = array<i64: 128, 128>}, {pipeline_mode = #tpu.pipeline_mode<synchronous>, transform_indices = @transform_4, window_bounds = array<i64: 1, 128>}, {transform_indices = @transform_5, window_bounds = array<i64: 16, 128>}]} {
    %c0 = arith.constant 0 : index
    %c0_0 = arith.constant 0 : index
    %0 = vector.load %arg1[%c0, %c0_0] : memref<16x128xbf16, #tpu.memory_space<vmem>>, vector<16x128xbf16>
    %c0_1 = arith.constant 0 : index
    %c0_2 = arith.constant 0 : index
    %1 = vector.load %arg2[%c0_1, %c0_2] : memref<128x128xbf16, #tpu.memory_space<vmem>>, vector<128x128xbf16>
    %cst = arith.constant dense<0.000000e+00> : vector<16x128xf32>
    %2 = tpu.matmul %0, %1, %cst {dimension_numbers = #tpu.dot_dimension_numbers<[1], [0], [0], [1], [0, 0, 1, 1], [], []>} : vector<16x128xbf16>, vector<128x128xbf16>, vector<16x128xf32> -> vector<16x128xf32>
    %c0_3 = arith.constant 0 : index
    %c0_4 = arith.constant 0 : index
    %3 = vector.load %arg3[%c0_3, %c0_4] : memref<1x128xf32, #tpu.memory_space<vmem>>, vector<1x128xf32>
    %4 = vector.broadcast %3 : vector<1x128xf32> to vector<16x128xf32>
    %5 = arith.addf %2, %4 : vector<16x128xf32>
    %6 = arith.mulf %5, %5 : vector<16x128xf32>
    %7 = arith.mulf %5, %6 : vector<16x128xf32>
    %cst_5 = arith.constant 4.471500e-02 : f32
    %8 = vector.broadcast %cst_5 : f32 to vector<16x128xf32>
    %9 = arith.mulf %8, %7 : vector<16x128xf32>
    %10 = arith.addf %5, %9 : vector<16x128xf32>
    %cst_6 = arith.constant 0.797884583 : f32
    %11 = vector.broadcast %cst_6 : f32 to vector<16x128xf32>
    %12 = arith.mulf %11, %10 : vector<16x128xf32>
    %13 = math.tanh %12 : vector<16x128xf32>
    %cst_7 = arith.constant 1.000000e+00 : f32
    %14 = vector.broadcast %cst_7 : f32 to vector<16x128xf32>
    %15 = arith.addf %14, %13 : vector<16x128xf32>
    %cst_8 = arith.constant 5.000000e-01 : f32
    %16 = vector.broadcast %cst_8 : f32 to vector<16x128xf32>
    %17 = arith.mulf %16, %15 : vector<16x128xf32>
    %18 = arith.mulf %5, %17 : vector<16x128xf32>
    %19 = arith.truncf %18 : vector<16x128xf32> to vector<16x128xbf16>
    %c0_9 = arith.constant 0 : index
    %c0_10 = arith.constant 0 : index
    %20 = vector.load %arg4[%c0_9, %c0_10] : memref<128x128xbf16, #tpu.memory_space<vmem>>, vector<128x128xbf16>
    %cst_11 = arith.constant dense<0.000000e+00> : vector<16x128xf32>
    %21 = tpu.matmul %19, %20, %cst_11 {dimension_numbers = #tpu.dot_dimension_numbers<[1], [0], [0], [1], [0, 0, 1, 1], [], []>} : vector<16x128xbf16>, vector<128x128xbf16>, vector<16x128xf32> -> vector<16x128xf32>
    %c0_12 = arith.constant 0 : index
    %c0_13 = arith.constant 0 : index
    %22 = vector.load %arg5[%c0_12, %c0_13] : memref<1x128xf32, #tpu.memory_space<vmem>>, vector<1x128xf32>
    %23 = vector.broadcast %22 : vector<1x128xf32> to vector<16x128xf32>
    %24 = arith.addf %21, %23 : vector<16x128xf32>
    %c0_14 = arith.constant 0 : index
    %c0_15 = arith.constant 0 : index
    %25 = vector.load %arg6[%c0_14, %c0_15] : memref<16x128xf32, #tpu.memory_space<vmem>>, vector<16x128xf32>
    tpu.vector_store %arg6[%c0_14, %c0_15], %24 {strides = array<i32>} : memref<16x128xf32, #tpu.memory_space<vmem>>, vector<16x128xf32>,
    return
  }
  func.func @transform_0(%arg0: i32) -> (i32, i32) {
    %c0_i32 = arith.constant 0 : i32
    %c0_i32_0 = arith.constant 0 : i32
    return %arg0, %c0_i32 : i32, i32
  }
  func.func @transform_1(%arg0: i32) -> (i32, i32) {
    %c0_i32 = arith.constant 0 : i32
    %c0_i32_0 = arith.constant 0 : i32
    %c0_i32_1 = arith.constant 0 : i32
    return %c0_i32, %c0_i32_0 : i32, i32
  }
  func.func @transform_2(%arg0: i32) -> (i32, i32) {
    %c0_i32 = arith.constant 0 : i32
    %c0_i32_0 = arith.constant 0 : i32
    %c0_i32_1 = arith.constant 0 : i32
    return %c0_i32, %c0_i32_0 : i32, i32
  }
  func.func @transform_3(%arg0: i32) -> (i32, i32) {
    %c0_i32 = arith.constant 0 : i32
    %c0_i32_0 = arith.constant 0 : i32
    %c0_i32_1 = arith.constant 0 : i32
    return %c0_i32, %c0_i32_0 : i32, i32
  }
  func.func @transform_4(%arg0: i32) -> (i32, i32) {
    %c0_i32 = arith.constant 0 : i32
    %c0_i32_0 = arith.constant 0 : i32
    %c0_i32_1 = arith.constant 0 : i32
    return %c0_i32, %c0_i32_0 : i32, i32
  }
  func.func @transform_5(%arg0: i32) -> (i32, i32) {
    %c0_i32 = arith.constant 0 : i32
    %c0_i32_0 = arith.constant 0 : i32
    return %arg0, %c0_i32 : i32, i32
  }
}

</mosaic_0001>

<bundles_post_ra>
// kernel: tpu_custom_call.1
= control target key start
LH: loop header
LB: loop body
LE: loop exit
PB: predicated region body
PF: predicated region fallthrough
CT: control target
= control target key end

     0   :  { %10 = vsyncpa [#allocation3], 0  ;;  %s1276_s0 = inlined_call_operand.hbm [shape: bf16[32,128], index: 0, kind: input, shape index: {}]   ;;  %s1277_s1 = inlined_call_operand.hbm [shape: bf16[128,128], index: 1, kind: input, shape index: {}]   ;;  %s1278_s2 = inlined_call_operand.vmem [shape: f32[1,128], index: 2, kind: input, shape index: {}]   ;;  %s1279_s3 = inlined_call_operand.hbm [shape: bf16[128,128], index: 3, kind: input, shape index: {}]   ;;  %s1280_s4 = inlined_call_operand.vmem [shape: f32[1,128], index: 4, kind: input, shape index: {}]   ;;  %s1281_s5 = inlined_call_operand.hbm [shape: f32[32,128], index: 5, kind: output, shape index: {}]  }
   0x1   :  { %12 = vsyncpa [#allocation3 + $0x1], 0 }
   0x2   :  { %13 = vsyncpa [#allocation6], 0 }
   0x3   :  { %14 = vsyncpa [#allocation4], 0 }
   0x4   :  { %16 = vsyncpa [#allocation4 + $0x1], 0  ;;  %s1023_s18 = smov 0   ;;  %s1025_s19 = smov 0  }
   0x5   :  { %s1027_s20 = smov 0   ;;  %s1029_s21 = smov 0  }
   0x6 LB: > { %s1044_s22 = sadd.s32 4294967295, %s981_s21   ;;  %s634_s23 = sadd.s32 4294967294, %s981_s21   ;;  %s981_s21 = sphi %s1029_s21, %s1301_s21   ;;  %s977_s20 = sphi %s1027_s20, %s1300_s20   ;;  %s973_s19 = sphi %s1025_s19, %s1299_s19   ;;  %s969_s18 = sphi %s1023_s18, %s1298_s18  }
   0x7   : > { %p42_p0 = scmp.ne.s32.totalorder %s973_s19, %s969_s18  ;;  %p1282_p1 = scmp.eq.s32.totalorder %s1044_s22, 0 }
   0x8   : > { %p156_p3 = scmp.eq.s32.totalorder %s634_s23, 1  ;;  %p635_p5 = scmp.ge.s32.totalorder %s981_s21, 1 }
   0x9   : > { %p1053_p4 = por %p1282_p1, %p42_p0  ;;  %p163_p7 = scmp.lt.s32.totalorder %s981_s21, 3 }
   0xa   : > { %p1058_p6 = por %p156_p3, %p42_p0  ;;  %s983_s27 = smov [#allocation5]  }
   0xb   : > { %s1285_s24 = scalar_select %p1053_p4, 1, 0 }
   0xc   : > { %s1286_s25 = scalar_select %p1058_p6, 1, 0 }
   0xd   : > { %p1063_p8 = pnand %p635_p5, %p163_p7  ;;  %s175_s28 = sshll.u32 %s983_s27, 4  ;;  %s1067_s28 = int_to_ptr.vmem [resolvable:$true] %s175_s28 }
   0xe   : > { %s984_s30 = smov [#allocation7]   ;;  %s825_s9 = scalar_lea.hbm %s1277_s1, 1024 }
   0xf   : > { %p743_p9 = pneg %p1063_p8  ;;  %s191_s6 = sshll.u32 %s984_s30, 4  ;;  %s1078_s6 = int_to_ptr.vmem [resolvable:$true] %s191_s6 }
  0x10   : > { %p826_p12 = scmp.ne.s32.totalorder %s1277_s1, %s825_s9  ;;  %p832_p5 = scmp.lt.u32.totalorder %s825_s9, %s1277_s1 }
  0x11   : > { %p1074_p11 = pnand %p743_p9, %p1282_p1 }
  0x13   : > { %p827_p13 = pneg %p1074_p11 }
  0x15   : > { %p828_p0 = pnand %p827_p13, %p826_p12 }
  0x17   : > { %p829_p3 = pneg %p828_p0 }
  0x19   : > { %p834_p7 = pnand %p832_p5, %p829_p3 }
  0x1b   : > { %837 = shalt.err (!%p834_p7)
}
  0x1c   : > { %s838_s14 = scalar_lea.vmem %s1067_s28, 1024  ;;  %p846_p2 = scmp.lt.s32.totalorder %s1067_s28, %s1067_s28 }
  0x1d   : > { %p839_p9 = scmp.ne.s32.totalorder %s1067_s28, %s838_s14  ;;  %p847_p12 = scmp.lt.s32.totalorder %s838_s14, %s838_s14 }
  0x1f   : > { %p841_p10 = pnand %p839_p9, %p827_p13  ;;  %p848_p0 = por %p847_p12, %p846_p2 }
  0x21   : > { %p842_p1 = pneg %p841_p10 }
  0x23   : > { %p849_p6 = pnand %p848_p0, %p842_p1 }
  0x25   : > { %852 = shalt.err (!%p849_p6)
}
  0x26   : > { %s985_s15 = smov 64   ;;  %s986_s16 = smov 4  }
  0x27   : > { %746 = dma.hbm_to_vmem [thread:$0]  (!%p1074_p11), %s1277_s1, 1024, %s1067_s28, [#allocation6], %s985_s15, %s985_s15, %s986_s16  }
  0x28   : > { %s853_s7 = scalar_lea.hbm %s1279_s3, 1024 }
  0x29   : > { %p854_p1 = scmp.ne.s32.totalorder %s1279_s3, %s853_s7  ;;  %p860_p10 = scmp.lt.u32.totalorder %s853_s7, %s1279_s3 }
  0x2b   : > { %p856_p2 = pnand %p854_p1, %p827_p13 }
  0x2d   : > { %p857_p6 = pneg %p856_p2 }
  0x2f   : > { %p862_p3 = pnand %p860_p10, %p857_p6 }
  0x31   : > { %865 = shalt.err (!%p862_p3)
}
  0x32   : > { %s866_s28 = scalar_lea.vmem %s1078_s6, 1024  ;;  %p874_p12 = scmp.lt.s32.totalorder %s1078_s6, %s1078_s6 }
  0x33   : > { %p867_p5 = scmp.ne.s32.totalorder %s1078_s6, %s866_s28  ;;  %p875_p0 = scmp.lt.s32.totalorder %s866_s28, %s866_s28 }
  0x35   : > { %p869_p7 = pnand %p867_p5, %p827_p13  ;;  %p876_p1 = por %p875_p0, %p874_p12 }
  0x37   : > { %p870_p9 = pneg %p869_p7 }
  0x39   : > { %p877_p2 = pnand %p876_p1, %p870_p9 }
  0x3b   : > { %880 = shalt.err (!%p877_p2)
}
  0x3c   : > { %749 = dma.hbm_to_vmem [thread:$0]  (!%p1074_p11), %s1279_s3, 1024, %s1078_s6, [#allocation6], %s985_s15, %s985_s15, %s986_s16  }
  0x3d   : > { %s1139_s29 = sadd.s32 1, %s981_s21   ;;  %s29_s14 = sadd.s32 1, %s977_s20 }
  0x3e   : > { %s26_s17 = ssub.s32 %s981_s21, %s1139_s29  ;;  %p36_p13 = scmp.ne.s32.totalorder %s977_s20, %s973_s19 }
  0x3f   : > { %p27_p6 = scmp.eq.s32.totalorder %s26_s17, 0  ;;  %p37_p10 = scmp.eq.s32.totalorder %s981_s21, 0 }
  0x40   : > { %p1289_p3 = scmp.eq.s32.totalorder %s1044_s22, 1  ;;  %p760_p7 = scmp.lt.s32.totalorder %s981_s21, 2 }
  0x41   : > { %s1155_s27 = scalar_select %p27_p6, %s977_s20, %s29_s14  }
  0x42   : > { %p1149_p5 = por %p1289_p3, %p36_p13  ;;  %p38_p9 = por %p37_p10, %p36_p13 }
  0x43   : > { %s208_s30 = sand.u32 1, %s977_s20   ;;  %s671_s6 = sshll.u32 %s981_s21, 7 }
  0x44   : > { %s1290_s23 = scalar_select %p1149_p5, 1, 0 }
  0x45   : > { %s639_s7 = sshll.u32 %s208_s30, 3  ;;  %s1162_s10 = scalar_lea.hbm %s1276_s0, %s671_s6 }
  0x46   : > { %s212_s11 = scalar_lea.vmem [#allocation2], %s639_s7  ;;  %p1166_p11 = pnand %p760_p7, %p38_p9 }
  0x47   : > { %s219_s28 = sshll.u32 %s212_s11, 4  ;;  %s1170_s13 = scalar_lea.sflag [#allocation3], %s208_s30  ;;  %s1164_s28 = int_to_ptr.vmem [resolvable:$true] %s219_s28 }
  0x48   : > { %s881_s14 = scalar_lea.hbm %s1162_s10, 128  ;;  %p883_p0 = pneg %p1166_p11 }
  0x49   : > { %p882_p12 = scmp.ne.s32.totalorder %s1162_s10, %s881_s14  ;;  %s886_s6 = scalar_lea.hbm %s1276_s0, 256 }
  0x4a   : > { %p887_p13 = scmp.lt.u32.totalorder %s1162_s10, %s1276_s0  ;;  %p888_p6 = scmp.lt.u32.totalorder %s886_s6, %s881_s14 }
  0x4b   : > { %p884_p1 = pnand %p883_p0, %p882_p12  ;;  %p890_p3 = scmp.lt.u32.totalorder %s881_s14, %s1162_s10 }
  0x4c   : > { %p889_p10 = por %p888_p6, %p887_p13 }
  0x4d   : > { %p885_p2 = pneg %p884_p1 }
  0x4e   : > { %p891_p7 = por %p890_p3, %p889_p10 }
  0x50   : > { %p892_p9 = pnand %p891_p7, %p885_p2 }
  0x52   : > { %895 = shalt.err (!%p892_p9)
}
  0x53   : > { %s896_s30 = scalar_lea.vmem %s1164_s28, 128  ;;  %s987_s11 = smov [#allocation2]  }
  0x54   : > { %p897_p12 = scmp.ne.s32.totalorder %s1164_s28, %s896_s30  ;;  %s901_s17 = sshll.u32 %s987_s11, 4  ;;  %s902_s17 = int_to_ptr.vmem [resolvable:$false] %s901_s17 }
  0x55   : > { %s903_s7 = scalar_lea.vmem %s902_s17, 256  ;;  %p904_p4 = scmp.lt.s32.totalorder %s1164_s28, %s902_s17 }
  0x56   : > { %p899_p1 = pnand %p897_p12, %p883_p0  ;;  %p905_p13 = scmp.lt.s32.totalorder %s903_s7, %s896_s30 }
  0x58   : > { %p900_p5 = pneg %p899_p1  ;;  %p906_p6 = por %p905_p13, %p904_p4 }
  0x5a   : > { %p907_p10 = pnand %p906_p6, %p900_p5 }
  0x5c   : > { %910 = shalt.err (!%p907_p10)
}
  0x5d   : > { %753 = dma.hbm_to_vmem [thread:$0]  (!%p1166_p11), %s1162_s10, 128, %s1164_s28, %s1170_s13, %s985_s15, %s985_s15, %s986_s16  }
  0x5e   : > { %231 = sbr.rel (%p1063_p8) target bundleno = 615 (0x267), region = 40  ;;  %s1204_s14 = sand.u32 (!%p1063_p8), 1, %s973_s19  }
  0x5f   : > { %s643_s6 = sshll.u32 (!%p1063_p8), %s1204_s14, 3  ;;  %s234_s8 = scalar_lea.sflag (!%p1063_p8), [#allocation3], %s1204_s14 }
  0x60   : > { %s1208_s9 = scalar_lea.vmem (!%p1063_p8), [#allocation2], %s643_s6  ;;  %p1292_p4 = scmp.ne.s32.totalorder (!%p1063_p8), %s1285_s24, 0 }
  0x65   : > { %956 = dma.done.wait (%p1292_p4), %s234_s8, 128  }
  0x66   : > { %958 = vsyncadd (%p1292_p4), %s234_s8, 4294967168  ;;  %p1293_p5 = scmp.eq.s32.totalorder %s1044_s22, 0 }
  0x68   : > { %960 = dma.done.wait (%p1293_p5), [#allocation6], 2048   ;;  %p1294_p8 = pmov %p1293_p5 }
  0x69   : > { %v988_v0 = vmov 0.0   ;;  %vm989_vm0 = vmmov 0   ;;  %v804_v1 = vld [vmem:[#allocation5] sm:$0xff]   ;;  %v805_v2 = vld [vmem:[#allocation5 + $0x8] sm:$0xff]   ;;  %v806_v3 = vld [vmem:[#allocation5 + $0x10] sm:$0xff]   ;;  %s646_s15 = sshll.u32 %s1204_s14, 4 }
  0x6a   : > { %962 = vsyncadd (%p1294_p8), [#allocation6], 4294965248  ;;  %691 = vmatprep.subr.bf16.mxu0 %v988_v0  ;;  %707 = vmatprep.mubr.msk.bf16.mxu0 %vm989_vm0, %v988_v0  ;;  %v807_v4 = vld [vmem:[#allocation5 + $0x18] sm:$0xff]   ;;  %v808_v5 = vld [vmem:[#allocation5 + $0x20] sm:$0xff]   ;;  %s271_s28 = scalar_lea.vmem [#allocation8], %s646_s15  ;;  %s672_s13 = sshll.u32 %s1044_s22, 8 }
  0x6b   : > { %711 = vmatprep.subr.bf16.mxu1 %v988_v0  ;;  %727 = vmatprep.mubr.msk.bf16.mxu1 %vm989_vm0, %v988_v0  ;;  %v809_v6 = vld [vmem:[#allocation5 + $0x28] sm:$0xff]   ;;  %v810_v7 = vld [vmem:[#allocation5 + $0x30] sm:$0xff]   ;;  %v811_v8 = vld [vmem:[#allocation5 + $0x38] sm:$0xff]   ;;  %s542_s12 = sshll.u32 %s271_s28, 4  ;;  %s1232_s17 = scalar_lea.hbm %s1281_s5, %s672_s13  ;;  %s1227_s12 = int_to_ptr.vmem [resolvable:$true] %s542_s12 }
  0x6c   : > { %692 = vmatpush3.bf16.msra.mxu0 %v804_v1  ;;  %v812_v9 = vld [vmem:[%s1208_s9] sm:$0xff]   ;;  %v813_v10 = vld [vmem:[#allocation7] sm:$0xff]   ;;  %v814_v11 = vld [vmem:[#allocation7 + $0x8] sm:$0xff]   ;;  %s529_s7 = scalar_lea.sflag [#allocation4], %s1204_s14  ;;  %s911_s22 = scalar_lea.vmem %s1227_s12, 256 }
  0x6d   : > { %693 = vmatprep.subr.bf16.mxu0 %v988_v0  ;;  %712 = vmatpush3.bf16.msra.mxu1 %v813_v10  ;;  %v815_v12 = vld [vmem:[#allocation7 + $0x10] sm:$0xff]   ;;  %v816_v13 = vld [vmem:[#allocation7 + $0x18] sm:$0xff]   ;;  %v817_v14 = vld [vmem:[#allocation7 + $0x20] sm:$0xff]   ;;  %p912_p11 = scmp.ne.s32.totalorder %s1227_s12, %s911_s22  ;;  %p1295_p0 = scmp.ne.s32.totalorder %s1290_s23, 0 }
  0x6e   : > { %713 = vmatprep.subr.bf16.mxu1 %v988_v0  ;;  %v818_v15 = vld [vmem:[#allocation7 + $0x28] sm:$0xff]   ;;  %v819_v16 = vld [vmem:[#allocation7 + $0x30] sm:$0xff]   ;;  %v820_v17 = vld [vmem:[#allocation7 + $0x38] sm:$0xff]   ;;  %s990_s6 = smov [#allocation8]  }
  0x6f   : > { %v647_v18 = vld [vmem:[%s1278_s2] ss:$0 sm:$0xff]  ;;  %p913_p2 = pnand %p912_p11, %p1295_p0  ;;  %s915_s8 = sshll.u32 %s990_s6, 4  ;;  %s916_s8 = int_to_ptr.vmem [resolvable:$false] %s915_s8 }
  0x70   : > { %694 = vmatpush3.bf16.msra.mxu0 %v805_v2  ;;  %v657_v44 = vld [vmem:[%s1280_s4] ss:$0 sm:$0xff]  ;;  %s917_s9 = scalar_lea.vmem %s916_s8, 512  ;;  %p918_p7 = scmp.lt.s32.totalorder %s1227_s12, %s916_s8 }
  0x71   : > { %695 = vmatprep.subr.bf16.mxu0 %v988_v0  ;;  %714 = vmatpush3.bf16.msra.mxu1 %v814_v11  ;;  %p914_p3 = pneg %p913_p2  ;;  %p919_p9 = scmp.lt.s32.totalorder %s917_s9, %s911_s22 }
  0x72   : > { %715 = vmatprep.subr.bf16.mxu1 %v988_v0 }
  0x73   : > { %p920_p12 = por %p919_p9, %p918_p7 }
  0x74   : > { %696 = vmatpush3.bf16.msra.mxu0 %v806_v3 }
  0x75   : > { %697 = vmatprep.subr.bf16.mxu0 %v988_v0  ;;  %716 = vmatpush3.bf16.msra.mxu1 %v815_v12  ;;  %p921_p1 = pnand %p920_p12, %p914_p3 }
  0x76   : > { %717 = vmatprep.subr.bf16.mxu1 %v988_v0 }
  0x78   : > { %698 = vmatpush3.bf16.msra.mxu0 %v807_v4 }
  0x79   : > { %699 = vmatprep.subr.bf16.mxu0 %v988_v0  ;;  %718 = vmatpush3.bf16.msra.mxu1 %v816_v13 }
  0x7a   : > { %719 = vmatprep.subr.bf16.mxu1 %v988_v0 }
  0x7c   : > { %700 = vmatpush3.bf16.msra.mxu0 %v808_v5 }
  0x7d   : > { %701 = vmatprep.subr.bf16.mxu0 %v988_v0  ;;  %720 = vmatpush3.bf16.msra.mxu1 %v817_v14 }
  0x7e   : > { %721 = vmatprep.subr.bf16.mxu1 %v988_v0 }
  0x80   : > { %702 = vmatpush3.bf16.msra.mxu0 %v809_v6 }
  0x81   : > { %703 = vmatprep.subr.bf16.mxu0 %v988_v0  ;;  %722 = vmatpush3.bf16.msra.mxu1 %v818_v15 }
  0x82   : > { %723 = vmatprep.subr.bf16.mxu1 %v988_v0 }
  0x84   : > { %704 = vmatpush3.bf16.msra.mxu0 %v810_v7 }
  0x85   : > { %705 = vmatprep.subr.bf16.mxu0 %v988_v0  ;;  %724 = vmatpush3.bf16.msra.mxu1 %v819_v16 }
  0x86   : > { %725 = vmatprep.subr.bf16.mxu1 %v988_v0 }
  0x88   : > { %706 = vmatpush3.bf16.msra.mxu0 %v811_v8 }
  0x89   : > { %726 = vmatpush3.bf16.msra.mxu1 %v820_v17 }
  0x8b   : > { %708 = vmatmul.mubr.bf16.vlgmr.msra.gmra.mrb[0].mxu0 %v812_v9 }
 0x15e   : > { %v388_v19 = vpop.f32.mrb[0].mxu0 }
 0x15f   : > { %v389_v20 = vadd.f32 %v647_v18, %v388_v19  ;;  %v709_v21 = vpop.f32.mrb[1].mxu0 }
 0x160   : > { %v391_v22 = vpop.f32.mrb[2].mxu0 }
 0x161   : > { %v395_v23 = vmul.f32 %v389_v20, %v389_v20  ;;  %v392_v24 = vadd.f32 %v647_v18, %v391_v22  ;;  %v710_v25 = vpop.f32.mrb[3].mxu0 }
 0x163   : > { %v397_v26 = vmul.f32 %v395_v23, %v389_v20  ;;  %v396_v27 = vmul.f32 %v392_v24, %v392_v24 }
 0x165   : > { %v399_v28 = vmul.f32 0.044715, %v397_v26  ;;  %v398_v29 = vmul.f32 %v396_v27, %v392_v24 }
 0x167   : > { %v401_v30 = vadd.f32 %v399_v28, %v389_v20  ;;  %v400_v31 = vmul.f32 0.044715, %v398_v29 }
 0x169   : > { %v403_v32 = vmul.f32 0.7978846, %v401_v30  ;;  %v402_v33 = vadd.f32 %v400_v31, %v392_v24 }
 0x16b   : > { %821 = vtanh.f32 %v403_v32  ;;  %v404_v34 = vmul.f32 0.7978846, %v402_v33 }
 0x16d   : > { %823 = vtanh.f32 %v404_v34 }
 0x175   : > { %v822_v35 = vpop.eup %821 }
 0x176   : > { %v407_v36 = vadd.f32 1.0, %v822_v35 }
 0x177   : > { %v824_v37 = vpop.eup %823 }
 0x178   : > { %v408_v38 = vadd.f32 1.0, %v824_v37  ;;  %v409_v39 = vmul.f32 0.5, %v407_v36 }
 0x17a   : > { %v410_v40 = vmul.f32 0.5, %v408_v38  ;;  %v411_v41 = vmul.f32 %v409_v39, %v389_v20 }
 0x17c   : > { %v412_v42 = vmul.f32 %v410_v40, %v392_v24 }
 0x17e   : > { %v413_v43 = vpack.c.bf16 %v412_v42, %v411_v41 }
 0x180   : > { %728 = vmatmul.mubr.bf16.vlgmr.msra.gmra.mrb[0].mxu1 %v413_v43 }
 0x253   : > { %v519_v45 = vpop.f32.mrb[0].mxu1 }
 0x254   : > { %v520_v46 = vadd.f32 %v657_v44, %v519_v45  ;;  %v729_v47 = vpop.f32.mrb[1].mxu1 }
 0x255   : > { %v522_v48 = vpop.f32.mrb[2].mxu1 }
 0x256   : > { %526 = vst [vmem:[%s271_s28] sm:$0xff] %v520_v46  ;;  %v523_v49 = vadd.f32 %v657_v44, %v522_v48  ;;  %v730_v50 = vpop.f32.mrb[3].mxu1 }
 0x258   : > { %527 = vst [vmem:[%s271_s28 + $0x8] sm:$0xff] %v523_v49 }
 0x259   : > { %924 = shalt.err (!%p921_p1)
}
 0x25a   : > { %s925_s24 = scalar_lea.hbm %s1232_s17, 256  ;;  %s929_s16 = scalar_lea.hbm %s1281_s5, 512 }
 0x25b   : > { %p926_p13 = scmp.ne.s32.totalorder %s1232_s17, %s925_s24  ;;  %p930_p4 = scmp.lt.u32.totalorder %s1232_s17, %s1281_s5 }
 0x25c   : > { %p931_p5 = scmp.lt.u32.totalorder %s929_s16, %s925_s24  ;;  %p933_p11 = scmp.lt.u32.totalorder %s925_s24, %s1232_s17 }
 0x25d   : > { %p927_p6 = pnand %p926_p13, %p1295_p0 }
 0x25e   : > { %p932_p8 = por %p931_p5, %p930_p4 }
 0x25f   : > { %p928_p10 = pneg %p927_p6 }
 0x260   : > { %p934_p2 = por %p933_p11, %p932_p8 }
 0x262   : > { %p935_p3 = pnand %p934_p2, %p928_p10 }
 0x264   : > { %938 = shalt.err (!%p935_p3)
}
 0x265   : > { %s991_s13 = smov 128   ;;  %s992_s30 = smov 8  }
 0x266   : > { %741 = dma.vmem_to_hbm [thread:$0]  (%p1295_p0), %s1227_s12, 256, %s1232_s17, %s529_s7, %s991_s13, %s991_s13, %s992_s30  }
 0x267 PF: > { %s557_s11 = sand.u32 1, %s969_s18   ;;  %p1296_p7 = scmp.ne.s32.totalorder %s1286_s25, 0 }
 0x268   : > { %p1297_p9 = scmp.ge.s32.totalorder %s981_s21, 2  ;;  %s558_s22 = scalar_lea.sflag [#allocation4], %s557_s11 }
 0x26a   : > { %p755_p12 = pnand %p1297_p9, %p1296_p7 }
 0x26c   : > { %964 = dma.done.wait (!%p755_p12), %s558_s22, 256  }
 0x26d   : > { %966 = vsyncadd (!%p755_p12), %s558_s22, 4294967040  ;;  %p19_p1 = scmp.ge.s32.totalorder %s1139_s29, 4   ;;  %s1298_s18 = smov %s973_s19 }
 0x26e   : > { %s1299_s19 = smov %s977_s20  ;;  %s1300_s20 = smov %s1155_s27 }
 0x26f   : > { %s1301_s21 = smov %s1139_s29  ;;  %21 = sbr.rel (!%p19_p1) target bundleno = 6 (0x6), region = 93 }
 0x276   :  { %563 = vsyncpa [#allocation3], 1 }
 0x277   :  { %565 = vsyncpa [#allocation3 + $0x1], 1 }
 0x278   :  { %566 = vsyncpa [#allocation6], 1 }
 0x279   :  { %567 = vsyncpa [#allocation4], 1 }
 0x27a   :  { %569 = vsyncpa [#allocation4 + $0x1], 1 }

</bundles_post_ra>
